<compile_context>
chip_gen: v5e
topology: v5e:2x2
jax: 0.10.0
libtpu: 0.0.40
codegen_flags: <defaults>
</compile_context>

<pallas_src>
import jax
import jax.numpy as jnp
from jax.experimental import pallas as pl
from jax.experimental.pallas import tpu as pltpu

_LANE = 128
_SUBLANE = 8


def _round_up(x, m):
    return ((x + m - 1) // m) * m


def _actor_kernel(ma_ref, x_ref, w1_ref, b1_ref, w2_ref, b2_ref,
                  w3_ref, b3_ref, o_ref):
    max_action = ma_ref[0, 0]                       # SMEM scalar read (free)
    # Layer 1: Linear + ReLU   (MXU matmul, f32 accumulation, f32 epilogue)
    h1 = jnp.dot(x_ref[...], w1_ref[...], preferred_element_type=jnp.float32)
    h1 = jnp.maximum(h1 + b1_ref[...], 0.0)
    # Layer 2: Linear + ReLU
    h2 = jnp.dot(h1.astype(w2_ref.dtype), w2_ref[...],
                 preferred_element_type=jnp.float32)
    h2 = jnp.maximum(h2 + b2_ref[...], 0.0)
    # Layer 3: Linear + Tanh (EUP, f32), scaled by max_action
    h3 = jnp.dot(h2.astype(w3_ref.dtype), w3_ref[...],
                 preferred_element_type=jnp.float32)
    o_ref[...] = (max_action * jnp.tanh(h3 + b3_ref[...])).astype(o_ref.dtype)


def prepare_actor_params(params, *, operand_dtype=jnp.float32):
    """One-time preparation: lane-pad every feature axis to a multiple of 128
    and cast the matmul operands to `operand_dtype` (biases stay f32 -- the
    elementwise epilogue is f32 on all TPU generations).

    Zero-padding is exactness-preserving for f32 operands; with bf16 operands
    results match to bf16 matmul precision (f32 accumulation kept).
    """
    op = jnp.dtype(operand_dtype)
    w1, b1 = params["W1"], params["b1"]
    w2, b2 = params["W2"], params["b2"]
    w3, b3 = params["W3"], params["b3"]

    S, H = w1.shape
    A = w3.shape[1]
    S_p = _round_up(S, _LANE)
    # NOTE: on v6e/v7x (2x256x256 MXU) padding H to a multiple of 256 can keep
    # the first two matmuls full-width; 128 is already optimal on v5e.
    H_p = _round_up(H, _LANE)
    A_p = _round_up(A, _LANE)

    f32 = jnp.float32
    w1_p = jnp.zeros((S_p, H_p), op).at[:S, :H].set(w1.astype(op))
    w2_p = jnp.zeros((H_p, H_p), op).at[:H, :H].set(w2.astype(op))
    w3_p = jnp.zeros((H_p, A_p), op).at[:H, :A].set(w3.astype(op))
    b1_p = jnp.zeros((1, H_p), f32).at[:, :H].set(b1.astype(f32).reshape(1, H))
    b2_p = jnp.zeros((1, H_p), f32).at[:, :H].set(b2.astype(f32).reshape(1, H))
    b3_p = jnp.zeros((1, A_p), f32).at[:, :A].set(b3.astype(f32).reshape(1, A))

    return {
        "W1": w1_p, "b1": b1_p,
        "W2": w2_p, "b2": b2_p,
        "W3": w3_p, "b3": b3_p,
        "state_dim": S, "hidden_dim": H, "action_dim": A,
    }


def actor_forward(state, prepared, max_action, *, block_batch=512):
    """state: [B, state_dim] float32. `prepared`: output of prepare_actor_params.

    The state is padded/tiled over a 1-D batch grid; pre-padded weights/biases
    stay resident in VMEM (single-buffered) across all grid steps.
    """
    w1_p, b1_p = prepared["W1"], prepared["b1"]
    w2_p, b2_p = prepared["W2"], prepared["b2"]
    w3_p, b3_p = prepared["W3"], prepared["b3"]
    S = prepared["state_dim"]
    A = prepared["action_dim"]
    S_p, H_p = w1_p.shape
    A_p = w3_p.shape[1]
    op = w1_p.dtype
    wbytes = jnp.dtype(op).itemsize

    B = state.shape[0]

    # Batch tile: multiple of 8 sublanes, capped so the grid has >= 2 steps
    # whenever B > 8 (so "parallel" semantics can use both v7x TensorCores).
    TB = min(_round_up(block_batch, _SUBLANE),
             _round_up(-(-B // 2), _SUBLANE))
    TB = max(TB, _SUBLANE)
    B_p = _round_up(B, TB)
    num_steps = B_p // TB
    grid = (num_steps,)

    # Only per-call padding on the hot path: the state tile (cast + pad).
    x_p = jnp.pad(state.astype(op), ((0, B_p - B), (0, S_p - S)))

    ma = jnp.full((1, 1), max_action, jnp.float32)

    # VMEM budget: 1x resident weights/biases (Buffered(1)), multi-buffered
    # streamed state/out tiles, f32 h1/h2 temporaries; 2x headroom, clamped
    # to v7x's 64 MiB physical VMEM.
    x_bufs = 3 if num_steps >= 3 else 2
    weights_bytes = (S_p * H_p + H_p * H_p + H_p * A_p) * wbytes \
        + (2 * H_p + A_p) * 4
    stream_bytes = x_bufs * TB * S_p * wbytes + 2 * TB * A_p * 4
    act_bytes = 2 * TB * H_p * 4
    vmem_limit = int(min(max(2 * (weights_bytes + stream_bytes + act_bytes),
                             32 * 1024 * 1024), 64 * 1024 * 1024))
    # TODO(synk): if resident weights ever exceed ~32 MiB (very large
    # hidden_dim), stream W2 over an extra reduction grid axis instead of
    # keeping all three weights resident.

    cost = pl.CostEstimate(
        flops=2 * B_p * (S_p * H_p + H_p * H_p + H_p * A_p),
        transcendentals=B_p * A_p,
        bytes_accessed=weights_bytes + B_p * S_p * wbytes + B_p * A_p * 4,
    )

    # Grid-invariant operands: single-buffered (no pointless double-buffer).
    def resident(shape):
        return pl.BlockSpec(shape, lambda i: (0, 0),
                            pipeline_mode=pl.Buffered(1))

    if num_steps >= 3:
        x_spec = pl.BlockSpec((TB, S_p), lambda i: (i, 0),
                              pipeline_mode=pl.Buffered(3))
    else:
        x_spec = pl.BlockSpec((TB, S_p), lambda i: (i, 0))

    out_p = pl.pallas_call(
        _actor_kernel,
        out_shape=jax.ShapeDtypeStruct((B_p, A_p), jnp.float32),
        grid=grid,
        in_specs=[
            pl.BlockSpec(memory_space=pltpu.MemorySpace.SMEM),   # max_action
            x_spec,                                              # state tile
            resident(w1_p.shape), resident(b1_p.shape),
            resident(w2_p.shape), resident(b2_p.shape),
            resident(w3_p.shape), resident(b3_p.shape),
        ],
        out_specs=pl.BlockSpec((TB, A_p), lambda i: (i, 0)),     # lane-dense
        compiler_params=pltpu.CompilerParams(
            dimension_semantics=("parallel",),
            vmem_limit_bytes=vmem_limit,
        ),
        cost_estimate=cost,
    )(ma, x_p, w1_p, b1_p, w2_p, b2_p, w3_p, b3_p)

    return out_p[:B, :A]


def init_actor_params(key, state_dim, hidden_dim, action_dim):
    """Deterministic init mirroring PyTorch nn.Linear default
    (U[-1/sqrt(in), 1/sqrt(in)]). Weights stored transposed as [in, out]."""
    keys = jax.random.split(key, 6)

    def linear(kw, kb, fan_in, fan_out):
        bound = 1.0 / jnp.sqrt(jnp.float32(fan_in))
        W = jax.random.uniform(kw, (fan_in, fan_out), jnp.float32, -bound, bound)
        b = jax.random.uniform(kb, (1, fan_out), jnp.float32, -bound, bound)
        return W, b

    W1, b1 = linear(keys[0], keys[1], state_dim, hidden_dim)
    W2, b2 = linear(keys[2], keys[3], hidden_dim, hidden_dim)
    W3, b3 = linear(keys[4], keys[5], hidden_dim, action_dim)
    return {"W1": W1, "b1": b1, "W2": W2, "b2": b2, "W3": W3, "b3": b3}


def actor_reference(state, params, max_action):
    h1 = jnp.maximum(state @ params["W1"] + params["b1"], 0.0)
    h2 = jnp.maximum(h1 @ params["W2"] + params["b2"], 0.0)
    return max_action * jnp.tanh(h2 @ params["W3"] + params["b3"])


if __name__ == "__main__":
    # Small shapes consistent with the module's forward:
    batch, state_dim, hidden_dim, action_dim = 8, 16, 32, 4
    max_action = 2.0

    key = jax.random.PRNGKey(0)
    k_params, k_state = jax.random.split(key)
    params = init_actor_params(k_params, state_dim, hidden_dim, action_dim)
    state = jax.random.normal(k_state, (batch, state_dim), jnp.float32)

    # One-time padding/cast of the weights (f32 operands -> exact results;
    # pass operand_dtype=jnp.bfloat16 here for the fast MXU path in training).
    prepared = prepare_actor_params(params, operand_dtype=jnp.float32)

    out = actor_forward(state, prepared, max_action)
    out = jax.block_until_ready(out)

    ref = actor_reference(state, params, max_action)
    assert out.shape == (batch, action_dim)
    assert jnp.allclose(out, ref, atol=1e-5, rtol=1e-5)
    print("KERNEL_OK")
</pallas_src>

<mosaic_0001>
module attributes {stable_mosaic.version = 11 : i64} {
  func.func @_actor_kernel(%arg0: i32, %arg1: memref<1x1xf32, #tpu.memory_space<smem>>, %arg2: memref<8x128xf32, #tpu.memory_space<vmem>>, %arg3: memref<128x128xf32, #tpu.memory_space<vmem>>, %arg4: memref<1x128xf32, #tpu.memory_space<vmem>>, %arg5: memref<128x128xf32, #tpu.memory_space<vmem>>, %arg6: memref<1x128xf32, #tpu.memory_space<vmem>>, %arg7: memref<128x128xf32, #tpu.memory_space<vmem>>, %arg8: memref<1x128xf32, #tpu.memory_space<vmem>>, %arg9: memref<8x128xf32, #tpu.memory_space<vmem>>) attributes {dimension_semantics = [#tpu.dimension_semantics<parallel>], iteration_bounds = array<i64: 1>, scalar_prefetch = 0 : i64, scratch_operands = 0 : i64, tpu.core_type = #tpu.core_type<tc>, window_params = [{transform_indices = @transform_0, window_bounds = array<i64: 1, 1>}, {transform_indices = @transform_1, window_bounds = array<i64: 8, 128>}, {pipeline_mode = #tpu.pipeline_mode<synchronous>, transform_indices = @transform_2, window_bounds = array<i64: 128, 128>}, {pipeline_mode = #tpu.pipeline_mode<synchronous>, transform_indices = @transform_3, window_bounds = array<i64: 1, 128>}, {pipeline_mode = #tpu.pipeline_mode<synchronous>, transform_indices = @transform_4, window_bounds = array<i64: 128, 128>}, {pipeline_mode = #tpu.pipeline_mode<synchronous>, transform_indices = @transform_5, window_bounds = array<i64: 1, 128>}, {pipeline_mode = #tpu.pipeline_mode<synchronous>, transform_indices = @transform_6, window_bounds = array<i64: 128, 128>}, {pipeline_mode = #tpu.pipeline_mode<synchronous>, transform_indices = @transform_7, window_bounds = array<i64: 1, 128>}, {transform_indices = @transform_8, window_bounds = array<i64: 8, 128>}]} {
    %c0 = arith.constant 0 : index
    %c0_0 = arith.constant 0 : index
    %0 = memref.load %arg1[%c0, %c0_0] : memref<1x1xf32, #tpu.memory_space<smem>>
    %c0_1 = arith.constant 0 : index
    %c0_2 = arith.constant 0 : index
    %1 = vector.load %arg2[%c0_1, %c0_2] : memref<8x128xf32, #tpu.memory_space<vmem>>, vector<8x128xf32>
    %c0_3 = arith.constant 0 : index
    %c0_4 = arith.constant 0 : index
    %2 = vector.load %arg3[%c0_3, %c0_4] : memref<128x128xf32, #tpu.memory_space<vmem>>, vector<128x128xf32>
    %cst = arith.constant dense<0.000000e+00> : vector<8x128xf32>
    %3 = tpu.matmul %1, %2, %cst {dimension_numbers = #tpu.dot_dimension_numbers<[1], [0], [0], [1], [0, 0, 1, 1], [], []>} : vector<8x128xf32>, vector<128x128xf32>, vector<8x128xf32> -> vector<8x128xf32>
    %c0_5 = arith.constant 0 : index
    %c0_6 = arith.constant 0 : index
    %4 = vector.load %arg4[%c0_5, %c0_6] : memref<1x128xf32, #tpu.memory_space<vmem>>, vector<1x128xf32>
    %5 = vector.broadcast %4 : vector<1x128xf32> to vector<8x128xf32>
    %6 = arith.addf %3, %5 : vector<8x128xf32>
    %cst_7 = arith.constant 0.000000e+00 : f32
    %7 = vector.broadcast %cst_7 : f32 to vector<8x128xf32>
    %8 = arith.maximumf %6, %7 : vector<8x128xf32>
    %c0_8 = arith.constant 0 : index
    %c0_9 = arith.constant 0 : index
    %9 = vector.load %arg5[%c0_8, %c0_9] : memref<128x128xf32, #tpu.memory_space<vmem>>, vector<128x128xf32>
    %cst_10 = arith.constant dense<0.000000e+00> : vector<8x128xf32>
    %10 = tpu.matmul %8, %9, %cst_10 {dimension_numbers = #tpu.dot_dimension_numbers<[1], [0], [0], [1], [0, 0, 1, 1], [], []>} : vector<8x128xf32>, vector<128x128xf32>, vector<8x128xf32> -> vector<8x128xf32>
    %c0_11 = arith.constant 0 : index
    %c0_12 = arith.constant 0 : index
    %11 = vector.load %arg6[%c0_11, %c0_12] : memref<1x128xf32, #tpu.memory_space<vmem>>, vector<1x128xf32>
    %12 = vector.broadcast %11 : vector<1x128xf32> to vector<8x128xf32>
    %13 = arith.addf %10, %12 : vector<8x128xf32>
    %cst_13 = arith.constant 0.000000e+00 : f32
    %14 = vector.broadcast %cst_13 : f32 to vector<8x128xf32>
    %15 = arith.maximumf %13, %14 : vector<8x128xf32>
    %c0_14 = arith.constant 0 : index
    %c0_15 = arith.constant 0 : index
    %16 = vector.load %arg7[%c0_14, %c0_15] : memref<128x128xf32, #tpu.memory_space<vmem>>, vector<128x128xf32>
    %cst_16 = arith.constant dense<0.000000e+00> : vector<8x128xf32>
    %17 = tpu.matmul %15, %16, %cst_16 {dimension_numbers = #tpu.dot_dimension_numbers<[1], [0], [0], [1], [0, 0, 1, 1], [], []>} : vector<8x128xf32>, vector<128x128xf32>, vector<8x128xf32> -> vector<8x128xf32>
    %c0_17 = arith.constant 0 : index
    %c0_18 = arith.constant 0 : index
    %18 = vector.load %arg8[%c0_17, %c0_18] : memref<1x128xf32, #tpu.memory_space<vmem>>, vector<1x128xf32>
    %19 = vector.broadcast %18 : vector<1x128xf32> to vector<8x128xf32>
    %20 = arith.addf %17, %19 : vector<8x128xf32>
    %21 = math.tanh %20 : vector<8x128xf32>
    %22 = vector.broadcast %0 : f32 to vector<8x128xf32>
    %23 = arith.mulf %22, %21 : vector<8x128xf32>
    %c0_19 = arith.constant 0 : index
    %c0_20 = arith.constant 0 : index
    %24 = vector.load %arg9[%c0_19, %c0_20] : memref<8x128xf32, #tpu.memory_space<vmem>>, vector<8x128xf32>
    tpu.vector_store %arg9[%c0_19, %c0_20], %23 {strides = array<i32>} : memref<8x128xf32, #tpu.memory_space<vmem>>, vector<8x128xf32>,
    return
  }
  func.func @transform_0(%arg0: i32) -> (i32, i32) {
    %c0_i32 = arith.constant 0 : i32
    %c0_i32_0 = arith.constant 0 : i32
    %c0_i32_1 = arith.constant 0 : i32
    return %c0_i32, %c0_i32_0 : i32, i32
  }
  func.func @transform_1(%arg0: i32) -> (i32, i32) {
    %c0_i32 = arith.constant 0 : i32
    %c0_i32_0 = arith.constant 0 : i32
    return %arg0, %c0_i32 : i32, i32
  }
  func.func @transform_2(%arg0: i32) -> (i32, i32) {
    %c0_i32 = arith.constant 0 : i32
    %c0_i32_0 = arith.constant 0 : i32
    %c0_i32_1 = arith.constant 0 : i32
    return %c0_i32, %c0_i32_0 : i32, i32
  }
  func.func @transform_3(%arg0: i32) -> (i32, i32) {
    %c0_i32 = arith.constant 0 : i32
    %c0_i32_0 = arith.constant 0 : i32
    %c0_i32_1 = arith.constant 0 : i32
    return %c0_i32, %c0_i32_0 : i32, i32
  }
  func.func @transform_4(%arg0: i32) -> (i32, i32) {
    %c0_i32 = arith.constant 0 : i32
    %c0_i32_0 = arith.constant 0 : i32
    %c0_i32_1 = arith.constant 0 : i32
    return %c0_i32, %c0_i32_0 : i32, i32
  }
  func.func @transform_5(%arg0: i32) -> (i32, i32) {
    %c0_i32 = arith.constant 0 : i32
    %c0_i32_0 = arith.constant 0 : i32
    %c0_i32_1 = arith.constant 0 : i32
    return %c0_i32, %c0_i32_0 : i32, i32
  }
  func.func @transform_6(%arg0: i32) -> (i32, i32) {
    %c0_i32 = arith.constant 0 : i32
    %c0_i32_0 = arith.constant 0 : i32
    %c0_i32_1 = arith.constant 0 : i32
    return %c0_i32, %c0_i32_0 : i32, i32
  }
  func.func @transform_7(%arg0: i32) -> (i32, i32) {
    %c0_i32 = arith.constant 0 : i32
    %c0_i32_0 = arith.constant 0 : i32
    %c0_i32_1 = arith.constant 0 : i32
    return %c0_i32, %c0_i32_0 : i32, i32
  }
  func.func @transform_8(%arg0: i32) -> (i32, i32) {
    %c0_i32 = arith.constant 0 : i32
    %c0_i32_0 = arith.constant 0 : i32
    return %arg0, %c0_i32 : i32, i32
  }
}

</mosaic_0001>

<bundles_post_ra>
// kernel: tpu_custom_call.1
= control target key start
LH: loop header
LB: loop body
LE: loop exit
PB: predicated region body
PF: predicated region fallthrough
CT: control target
= control target key end

     0   :  { %14 = vsyncpa [#allocation4], 0  ;;  %s458_s0 = inlined_call_operand.<no memory space> [shape: f32[1,1], index: 0, kind: input, shape index: {}]   ;;  %s459_s1 = inlined_call_operand.hbm [shape: f32[8,128], index: 1, kind: input, shape index: {}]   ;;  %s460_s2 = inlined_call_operand.hbm [shape: f32[128,128], index: 2, kind: input, shape index: {}]   ;;  %s461_s3 = inlined_call_operand.vmem [shape: f32[1,128], index: 3, kind: input, shape index: {}]   ;;  %s462_s4 = inlined_call_operand.hbm [shape: f32[128,128], index: 4, kind: input, shape index: {}]   ;;  %s463_s5 = inlined_call_operand.vmem [shape: f32[1,128], index: 5, kind: input, shape index: {}]   ;;  %s464_s6 = inlined_call_operand.hbm [shape: f32[128,128], index: 6, kind: input, shape index: {}]   ;;  %s465_s7 = inlined_call_operand.vmem [shape: f32[1,128], index: 7, kind: input, shape index: {}]   ;;  %s466_s8 = inlined_call_operand.hbm [shape: f32[8,128], index: 8, kind: output, shape index: {}]  }
   0x1   :  { %15 = vsyncpa [#allocation7], 0 }
   0x2   :  { %16 = vsyncpa [#allocation10], 0  ;;  %s35_s29 = sshll.u32 %s460_s2, 4  ;;  %s36_s29 = int_to_ptr.hbm [resolvable:$true] %s35_s29 }
   0x3   :  { %17 = vsyncpa [#allocation5], 0  ;;  %s379_s30 = smov [#allocation6]   ;;  %s25_s12 = sshll.u32 %s459_s1, 4  ;;  %s26_s12 = int_to_ptr.hbm [resolvable:$true] %s25_s12 }
   0x4   :  { %s37_s9 = sshll.u32 %s379_s30, 4  ;;  %s380_s13 = smov 128   ;;  %s38_s9 = int_to_ptr.vmem [resolvable:$true] %s37_s9 }
   0x5   :  { %s381_s14 = smov 8   ;;  %s382_s15 = smov [#allocation3]  }
   0x6   :  { %43 = dma.hbm_to_vmem [thread:$0]  %s36_s29, 2048, %s38_s9, [#allocation7], %s380_s13, %s380_s13, %s381_s14  }
   0x7   :  { %s27_s16 = sshll.u32 %s382_s15, 4  ;;  %s50_s19 = sshll.u32 %s462_s4, 4  ;;  %s28_s16 = int_to_ptr.vmem [resolvable:$true] %s27_s16  ;;  %s51_s19 = int_to_ptr.hbm [resolvable:$true] %s50_s19 }
   0x8   :  { %30 = dma.hbm_to_vmem [thread:$0]  %s26_s12, 128, %s28_s16, [#allocation4]  }
   0x9   :  { %s65_s21 = sshll.u32 %s464_s6, 4  ;;  %s383_s22 = smov [#allocation8]   ;;  %s66_s21 = int_to_ptr.hbm [resolvable:$true] %s65_s21 }
   0xa   :  { %s52_s23 = sshll.u32 %s383_s22, 4  ;;  %s384_s1 = smov [#allocation9]   ;;  %s53_s23 = int_to_ptr.vmem [resolvable:$true] %s52_s23 }
   0xb   :  { %58 = dma.hbm_to_vmem [thread:$0]  %s51_s19, 2048, %s53_s23, [#allocation7], %s380_s13, %s380_s13, %s381_s14  }
   0xc   :  { %s67_s24 = sshll.u32 %s384_s1, 4  ;;  %s68_s24 = int_to_ptr.vmem [resolvable:$true] %s67_s24 }
   0xd   :  { %73 = dma.hbm_to_vmem [thread:$0]  %s66_s21, 2048, %s68_s24, [#allocation10], %s380_s13, %s380_s13, %s381_s14  }
   0xe   :  { %371 = dma.done.wait [#allocation4], 128  }
   0xf   :  { %372 = vsyncadd [#allocation4], 4294967168 }
  0x10   :  { %373 = dma.done.wait [#allocation7], 4096  }
  0x11   :  { %374 = vsyncadd [#allocation7], 4294963200 }
  0x12   :  { %375 = dma.done.wait [#allocation10], 2048  }
  0x13   :  { %376 = vsyncadd [#allocation10], 4294965248  ;;  %v109_v0 = vld [vmem:[#allocation6 + $0x78] sm:$0xff]  ;;  %v108_v1 = vld [vmem:[#allocation6 + $0x70] sm:$0xff]  ;;  %v217_v60 = vstv %s458_s0  ;;  %s385_s30 = smov [#allocation11]  }
  0x14   :  { %114 = vmatpush.msra.mxu0 %v109_v0  ;;  %v107_v2 = vld [vmem:[#allocation6 + $0x68] sm:$0xff]  ;;  %v106_v3 = vld [vmem:[#allocation6 + $0x60] sm:$0xff]  ;;  %v150_v4 = vld [vmem:[#allocation8 + $0x78] sm:$0xff]  ;;  %s225_s9 = sshll.u32 %s385_s30, 4  ;;  %s226_s9 = int_to_ptr.vmem [resolvable:$true] %s225_s9 }
  0x15   :  { %v105_v5 = vld [vmem:[#allocation6 + $0x58] sm:$0xff]  ;;  %155 = vmatpush.msra.mxu1 %v150_v4  ;;  %v149_v6 = vld [vmem:[#allocation8 + $0x70] sm:$0xff]  ;;  %v148_v7 = vld [vmem:[#allocation8 + $0x68] sm:$0xff] }
  0x16   :  { %115 = vmatpush.msra.mxu0 %v108_v1  ;;  %v104_v8 = vld [vmem:[#allocation6 + $0x50] sm:$0xff]  ;;  %v147_v9 = vld [vmem:[#allocation8 + $0x60] sm:$0xff]  ;;  %v103_v10 = vld [vmem:[#allocation6 + $0x48] sm:$0xff] }
  0x17   :  { %156 = vmatpush.msra.mxu1 %v149_v6  ;;  %v146_v11 = vld [vmem:[#allocation8 + $0x58] sm:$0xff]  ;;  %v102_v12 = vld [vmem:[#allocation6 + $0x40] sm:$0xff]  ;;  %v145_v13 = vld [vmem:[#allocation8 + $0x50] sm:$0xff] }
  0x18   :  { %116 = vmatpush.msra.mxu0 %v107_v2  ;;  %v101_v14 = vld [vmem:[#allocation6 + $0x38] sm:$0xff]  ;;  %v144_v15 = vld [vmem:[#allocation8 + $0x48] sm:$0xff]  ;;  %v100_v16 = vld [vmem:[#allocation6 + $0x30] sm:$0xff] }
  0x19   :  { %157 = vmatpush.msra.mxu1 %v148_v7  ;;  %v143_v17 = vld [vmem:[#allocation8 + $0x40] sm:$0xff]  ;;  %v99_v18 = vld [vmem:[#allocation6 + $0x28] sm:$0xff]  ;;  %v142_v19 = vld [vmem:[#allocation8 + $0x38] sm:$0xff] }
  0x1a   :  { %117 = vmatpush.msra.mxu0 %v106_v3  ;;  %v98_v20 = vld [vmem:[#allocation6 + $0x20] sm:$0xff]  ;;  %v141_v21 = vld [vmem:[#allocation8 + $0x30] sm:$0xff]  ;;  %v97_v22 = vld [vmem:[#allocation6 + $0x18] sm:$0xff] }
  0x1b   :  { %158 = vmatpush.msra.mxu1 %v147_v9  ;;  %v140_v23 = vld [vmem:[#allocation8 + $0x28] sm:$0xff]  ;;  %v96_v24 = vld [vmem:[#allocation6 + $0x10] sm:$0xff]  ;;  %v139_v25 = vld [vmem:[#allocation8 + $0x20] sm:$0xff] }
  0x1c   :  { %118 = vmatpush.msra.mxu0 %v105_v5  ;;  %v95_v26 = vld [vmem:[#allocation6 + $0x8] sm:$0xff]  ;;  %v138_v27 = vld [vmem:[#allocation8 + $0x18] sm:$0xff]  ;;  %v94_v28 = vld [vmem:[#allocation6] sm:$0xff] }
  0x1d   :  { %159 = vmatpush.msra.mxu1 %v146_v11  ;;  %v93_v29 = vld [vmem:[#allocation3] sm:$0xff]  ;;  %v137_v30 = vld [vmem:[#allocation8 + $0x10] sm:$0xff]  ;;  %v136_v31 = vld [vmem:[#allocation8 + $0x8] sm:$0xff] }
  0x1e   :  { %119 = vmatpush.msra.mxu0 %v104_v8  ;;  %v135_v32 = vld [vmem:[#allocation8] sm:$0xff]  ;;  %v191_v33 = vld [vmem:[#allocation9 + $0x78] sm:$0xff]  ;;  %v190_v34 = vld [vmem:[#allocation9 + $0x70] sm:$0xff] }
  0x1f   :  { %160 = vmatpush.msra.mxu1 %v145_v13  ;;  %196 = vmatpush.msra.mxu2 %v191_v33  ;;  %v189_v35 = vld [vmem:[#allocation9 + $0x68] sm:$0xff]  ;;  %v188_v36 = vld [vmem:[#allocation9 + $0x60] sm:$0xff]  ;;  %v187_v37 = vld [vmem:[#allocation9 + $0x58] sm:$0xff] }
  0x20   :  { %120 = vmatpush.msra.mxu0 %v103_v10  ;;  %v186_v38 = vld [vmem:[#allocation9 + $0x50] sm:$0xff]  ;;  %v185_v39 = vld [vmem:[#allocation9 + $0x48] sm:$0xff]  ;;  %v184_v40 = vld [vmem:[#allocation9 + $0x40] sm:$0xff] }
  0x21   :  { %161 = vmatpush.msra.mxu1 %v144_v15  ;;  %197 = vmatpush.msra.mxu2 %v190_v34  ;;  %v183_v41 = vld [vmem:[#allocation9 + $0x38] sm:$0xff]  ;;  %v182_v42 = vld [vmem:[#allocation9 + $0x30] sm:$0xff]  ;;  %v181_v43 = vld [vmem:[#allocation9 + $0x28] sm:$0xff] }
  0x22   :  { %121 = vmatpush.msra.mxu0 %v102_v12  ;;  %v180_v44 = vld [vmem:[#allocation9 + $0x20] sm:$0xff]  ;;  %v179_v45 = vld [vmem:[#allocation9 + $0x18] sm:$0xff]  ;;  %v178_v50 = vld [vmem:[#allocation9 + $0x10] sm:$0xff] }
  0x23   :  { %162 = vmatpush.msra.mxu1 %v143_v17  ;;  %198 = vmatpush.msra.mxu2 %v189_v35  ;;  %v246_v46 = vld [vmem:[%s461_s3] ss:$0 sm:$0xff]  ;;  %v177_v51 = vld [vmem:[#allocation9 + $0x8] sm:$0xff]  ;;  %v176_v52 = vld [vmem:[#allocation9] sm:$0xff] }
  0x24   :  { %122 = vmatpush.msra.mxu0 %v101_v14  ;;  %v247_v53 = vld [vmem:[%s463_s5] ss:$0 sm:$0xff]  ;;  %s227_s5 = sshll.u32 %s466_s8, 4  ;;  %s228_s5 = int_to_ptr.hbm [resolvable:$true] %s227_s5 }
  0x25   :  { %163 = vmatpush.msra.mxu1 %v142_v19  ;;  %199 = vmatpush.msra.mxu2 %v188_v36  ;;  %v248_v57 = vld [vmem:[%s465_s7] ss:$0 sm:$0xff] }
  0x26   :  { %123 = vmatpush.msra.mxu0 %v100_v16 }
  0x27   :  { %164 = vmatpush.msra.mxu1 %v141_v21  ;;  %200 = vmatpush.msra.mxu2 %v187_v37 }
  0x28   :  { %124 = vmatpush.msra.mxu0 %v99_v18 }
  0x29   :  { %165 = vmatpush.msra.mxu1 %v140_v23  ;;  %201 = vmatpush.msra.mxu2 %v186_v38 }
  0x2a   :  { %125 = vmatpush.msra.mxu0 %v98_v20 }
  0x2b   :  { %166 = vmatpush.msra.mxu1 %v139_v25  ;;  %202 = vmatpush.msra.mxu2 %v185_v39 }
  0x2c   :  { %126 = vmatpush.msra.mxu0 %v97_v22 }
  0x2d   :  { %167 = vmatpush.msra.mxu1 %v138_v27  ;;  %203 = vmatpush.msra.mxu2 %v184_v40 }
  0x2e   :  { %127 = vmatpush.msra.mxu0 %v96_v24 }
  0x2f   :  { %168 = vmatpush.msra.mxu1 %v137_v30  ;;  %204 = vmatpush.msra.mxu2 %v183_v41 }
  0x30   :  { %128 = vmatpush.msra.mxu0 %v95_v26 }
  0x31   :  { %169 = vmatpush.msra.mxu1 %v136_v31  ;;  %205 = vmatpush.msra.mxu2 %v182_v42 }
  0x32   :  { %129 = vmatpush.msra.mxu0 %v94_v28 }
  0x33   :  { %130 = vmatmul.f32.vlgmr.msra.gmra.mxu0 %v93_v29  ;;  %170 = vmatpush.msra.mxu1 %v135_v32 }
  0x34   :  { %206 = vmatpush.msra.mxu2 %v181_v43 }
  0x36   :  { %207 = vmatpush.msra.mxu2 %v180_v44 }
  0x38   :  { %208 = vmatpush.msra.mxu2 %v179_v45 }
  0x3a   :  { %209 = vmatpush.msra.mxu2 %v178_v50 }
  0x3c   :  { %210 = vmatpush.msra.mxu2 %v177_v51 }
  0x3e   :  { %211 = vmatpush.msra.mxu2 %v176_v52 }
  0xb0   :  { %v131_v47 = vpop.f32.mrf.mxu0 }
  0xb1   :  { %v132_v48 = vadd.f32 %v246_v46, %v131_v47 }
  0xb3   :  { %v134_v49 = vmax.f32 %v132_v48, 0.0 }
  0xb5   :  { %171 = vmatmul.f32.vlgmr.msra.gmra.mxu1 %v134_v49 }
 0x132   :  { %v172_v54 = vpop.f32.mrf.mxu1 }
 0x133   :  { %v173_v55 = vadd.f32 %v247_v53, %v172_v54 }
 0x135   :  { %v175_v56 = vmax.f32 %v173_v55, 0.0 }
 0x137   :  { %212 = vmatmul.f32.vlgmr.msra.gmra.mxu2 %v175_v56 }
 0x1ba   :  { %v213_v58 = vpop.f32.mrf.mxu2 }
 0x1bb   :  { %v214_v59 = vadd.f32 %v248_v57, %v213_v58 }
 0x1bd   :  { %249 = vtanh.f32 %v214_v59 }
 0x1c3   :  { %v250_v61 = vpop.eup %249 }
 0x1c4   :  { %v218_v62 = vmul.f32 %v250_v61, %v217_v60 }
 0x1c6   :  { %219 = vst [vmem:[#allocation11] sm:$0xff] %v218_v62 }
 0x1c7   :  { %230 = dma.vmem_to_hbm [thread:$0]  %s226_s9, 128, %s228_s5, [#allocation5]  }
 0x1c8   :  { %377 = dma.done.wait [#allocation5], 128  }
 0x1c9   :  { %378 = vsyncadd [#allocation5], 4294967168 }
 0x1ca   :  { %235 = vsyncpa [#allocation4], 1 }
 0x1cb   :  { %236 = vsyncpa [#allocation7], 1 }
 0x1cc   :  { %237 = vsyncpa [#allocation10], 1 }
 0x1cd   :  { %238 = vsyncpa [#allocation5], 1 }

</bundles_post_ra>
